<compile_context>
chip_gen: v6e
topology: v6e:2x2x1
jax: 0.10.0
libtpu: 0.0.40
codegen_flags: <defaults>
</compile_context>

<pallas_src>
import functools

import jax
import jax.numpy as jnp
from jax.experimental import pallas as pl
from jax.experimental.pallas import tpu as pltpu  # noqa: F401  (not needed at these shapes)


def _rnn_cell_kernel(x_ref, h_ref, wx_ref, wh_ref, b_ref, slab_ref, *, hidden_size):
    # acc = [x | h] @ [Wh_T | Wo_T] + [bh | bo]   (fused along the N axis),
    # realized as two K-slices so no in-kernel concat of the activations is needed.
    acc = jnp.dot(x_ref[...], wx_ref[...], preferred_element_type=jnp.float32)
    acc = acc + jnp.dot(h_ref[...], wh_ref[...], preferred_element_type=jnp.float32)
    acc = acc + b_ref[...]                                   # (B, H+O)

    hid = acc[:, :hidden_size]                               # (B, H)  new hidden (no nonlinearity)
    logits = acc[:, hidden_size:]                            # (B, O)

    # LogSoftmax over the feature axis.
    m = jnp.max(logits, axis=-1, keepdims=True)
    shifted = logits - m
    lse = jnp.log(jnp.sum(jnp.exp(shifted), axis=-1, keepdims=True))
    logp = shifted - lse

    # Single fused output slab: [new_hidden | log_probs]  -> one output DMA.
    slab_ref[:, :hidden_size] = hid.astype(slab_ref.dtype)
    slab_ref[:, hidden_size:] = logp.astype(slab_ref.dtype)


def prepare_rnn1_params(w_i2h, b_i2h, w_i2o, b_i2o):
    """One-time parameter prep (NOT in the per-step path).

    PyTorch nn.Linear layout in:  w_i2h (H, I+H), w_i2o (O, I+H).
    Returns N-fused, pre-transposed weights split along K:
      wx (I, H+O), wh (H, H+O), b_fused (1, H+O)
    so that  [x | h] @ [w_i2h.T | w_i2o.T] + [b_i2h | b_i2o]
           =  x @ wx + h @ wh + b_fused.
    """
    hidden_size = w_i2h.shape[0]
    input_plus_hidden = w_i2h.shape[1]
    input_size = input_plus_hidden - hidden_size

    w_fused = jnp.concatenate([w_i2h, w_i2o], axis=0).T            # (I+H, H+O)
    wx = w_fused[:input_size]                                      # (I, H+O)
    wh = w_fused[input_size:]                                      # (H, H+O)
    b_fused = jnp.concatenate([b_i2h, b_i2o]).reshape(1, -1)       # (1, H+O)
    return wx, wh, b_fused


def rnn1_forward(input_tensor, hidden_tensor, wx, wh, b_fused):
    """Pallas equivalent of RNN_1.forward (single step).

    input_tensor : (B, I) f32     hidden_tensor: (B, H) f32
    wx (I, H+O), wh (H, H+O), b_fused (1, H+O)  -- from prepare_rnn1_params.
    Returns (log_softmax_output (B, O), new_hidden (B, H)).
    """
    B, I = input_tensor.shape
    H = hidden_tensor.shape[1]
    HO = b_fused.shape[1]

    kernel = functools.partial(_rnn_cell_kernel, hidden_size=H)

    # Tiny problem -> single grid point, full-array blocks (block_shape == array
    # shape satisfies the (8,128) tiling rule).
    slab = pl.pallas_call(
        kernel,
        out_shape=jax.ShapeDtypeStruct((B, HO), jnp.float32),
        in_specs=[
            pl.BlockSpec((B, I), lambda: (0, 0)),
            pl.BlockSpec((B, H), lambda: (0, 0)),
            pl.BlockSpec((I, HO), lambda: (0, 0)),
            pl.BlockSpec((H, HO), lambda: (0, 0)),
            pl.BlockSpec((1, HO), lambda: (0, 0)),
        ],
        out_specs=pl.BlockSpec((B, HO), lambda: (0, 0)),
    )(input_tensor, hidden_tensor, wx, wh, b_fused)

    new_hidden = slab[:, :H]
    log_probs = slab[:, H:]
    return log_probs, new_hidden


def _linear_init(key, out_features, in_features):
    """Deterministic init matching nn.Linear's U(-1/sqrt(in), 1/sqrt(in))."""
    k_w, k_b = jax.random.split(key)
    bound = 1.0 / jnp.sqrt(jnp.float32(in_features))
    w = jax.random.uniform(k_w, (out_features, in_features),
                           minval=-bound, maxval=bound, dtype=jnp.float32)
    b = jax.random.uniform(k_b, (out_features,),
                           minval=-bound, maxval=bound, dtype=jnp.float32)
    return w, b


if __name__ == "__main__":
    batch = 2
    input_size = 16
    hidden_size = 32
    output_size = 8

    key = jax.random.PRNGKey(0)
    k_x, k_h, k_i2h, k_i2o = jax.random.split(key, 4)

    x = jax.random.normal(k_x, (batch, input_size), dtype=jnp.float32)
    h0 = jnp.zeros((batch, hidden_size), dtype=jnp.float32)   # init_hidden semantics

    w_i2h, b_i2h = _linear_init(k_i2h, hidden_size, input_size + hidden_size)
    w_i2o, b_i2o = _linear_init(k_i2o, output_size, input_size + hidden_size)

    # One-time param prep (hoisted out of the per-step path).
    wx, wh, b_fused = prepare_rnn1_params(w_i2h, b_i2h, w_i2o, b_i2o)
    wx, wh, b_fused = jax.block_until_ready((wx, wh, b_fused))

    step = jax.jit(rnn1_forward)
    out, hid = step(x, h0, wx, wh, b_fused)
    jax.block_until_ready((out, hid))

    # Sanity check vs. plain-JAX reference of the original module semantics.
    combined = jnp.concatenate([x, h0], axis=1)
    hid_ref = combined @ w_i2h.T + b_i2h
    logits_ref = combined @ w_i2o.T + b_i2o
    out_ref = jax.nn.log_softmax(logits_ref, axis=1)
    assert jnp.allclose(out, out_ref, atol=1e-5), "output mismatch"
    assert jnp.allclose(hid, hid_ref, atol=1e-5), "hidden mismatch"

    print("KERNEL_OK")
</pallas_src>

<mosaic_0001>
module attributes {stable_mosaic.version = 11 : i64} {
  func.func @_rnn_cell_kernel(%arg0: memref<2x16xf32, #tpu.memory_space<vmem>>, %arg1: memref<2x32xf32, #tpu.memory_space<vmem>>, %arg2: memref<16x40xf32, #tpu.memory_space<vmem>>, %arg3: memref<32x40xf32, #tpu.memory_space<vmem>>, %arg4: memref<1x40xf32, #tpu.memory_space<vmem>>, %arg5: memref<2x40xf32, #tpu.memory_space<vmem>>) attributes {dimension_semantics = [], scalar_prefetch = 0 : i64, scratch_operands = 0 : i64, tpu.core_type = #tpu.core_type<tc>} {
    %c0 = arith.constant 0 : index
    %c0_0 = arith.constant 0 : index
    %0 = vector.load %arg0[%c0, %c0_0] : memref<2x16xf32, #tpu.memory_space<vmem>>, vector<2x16xf32>
    %c0_1 = arith.constant 0 : index
    %c0_2 = arith.constant 0 : index
    %1 = vector.load %arg2[%c0_1, %c0_2] : memref<16x40xf32, #tpu.memory_space<vmem>>, vector<16x40xf32>
    %cst = arith.constant dense<0.000000e+00> : vector<2x40xf32>
    %2 = tpu.matmul %0, %1, %cst {dimension_numbers = #tpu.dot_dimension_numbers<[1], [0], [0], [1], [0, 0, 1, 1], [], []>} : vector<2x16xf32>, vector<16x40xf32>, vector<2x40xf32> -> vector<2x40xf32>
    %c0_3 = arith.constant 0 : index
    %c0_4 = arith.constant 0 : index
    %3 = vector.load %arg1[%c0_3, %c0_4] : memref<2x32xf32, #tpu.memory_space<vmem>>, vector<2x32xf32>
    %c0_5 = arith.constant 0 : index
    %c0_6 = arith.constant 0 : index
    %4 = vector.load %arg3[%c0_5, %c0_6] : memref<32x40xf32, #tpu.memory_space<vmem>>, vector<32x40xf32>
    %cst_7 = arith.constant dense<0.000000e+00> : vector<2x40xf32>
    %5 = tpu.matmul %3, %4, %cst_7 {dimension_numbers = #tpu.dot_dimension_numbers<[1], [0], [0], [1], [0, 0, 1, 1], [], []>} : vector<2x32xf32>, vector<32x40xf32>, vector<2x40xf32> -> vector<2x40xf32>
    %6 = arith.addf %2, %5 : vector<2x40xf32>
    %c0_8 = arith.constant 0 : index
    %c0_9 = arith.constant 0 : index
    %7 = vector.load %arg4[%c0_8, %c0_9] : memref<1x40xf32, #tpu.memory_space<vmem>>, vector<1x40xf32>
    %8 = vector.broadcast %7 : vector<1x40xf32> to vector<2x40xf32>
    %9 = arith.addf %6, %8 : vector<2x40xf32>
    %10 = vector.extract_strided_slice %9 {offsets = [0, 0], sizes = [2, 32], strides = [1, 1]} : vector<2x40xf32> to vector<2x32xf32>
    %11 = vector.extract_strided_slice %9 {offsets = [0, 32], sizes = [2, 8], strides = [1, 1]} : vector<2x40xf32> to vector<2x8xf32>
    %cst_10 = arith.constant dense<0xFF800000> : vector<2xf32>
    %12 = vector.multi_reduction <maximumf>, %11, %cst_10 [1] : vector<2x8xf32> to vector<2xf32>
    %13 = vector.shape_cast %12 : vector<2xf32> to vector<2x1xf32>
    %14 = vector.broadcast %13 : vector<2x1xf32> to vector<2x8xf32>
    %15 = arith.subf %11, %14 : vector<2x8xf32>
    %16 = math.exp %15 : vector<2x8xf32>
    %cst_11 = arith.constant dense<0.000000e+00> : vector<2xf32>
    %17 = vector.multi_reduction <add>, %16, %cst_11 [1] : vector<2x8xf32> to vector<2xf32>
    %18 = vector.shape_cast %17 : vector<2xf32> to vector<2x1xf32>
    %19 = math.log %18 : vector<2x1xf32>
    %20 = vector.broadcast %19 : vector<2x1xf32> to vector<2x8xf32>
    %21 = arith.subf %15, %20 : vector<2x8xf32>
    %c0_12 = arith.constant 0 : index
    %c0_13 = arith.constant 0 : index
    %22 = vector.load %arg5[%c0_12, %c0_13] : memref<2x40xf32, #tpu.memory_space<vmem>>, vector<2x32xf32>
    tpu.vector_store %arg5[%c0_12, %c0_13], %10 {strides = array<i32>} : memref<2x40xf32, #tpu.memory_space<vmem>>, vector<2x32xf32>,
    %c0_14 = arith.constant 0 : index
    %c32 = arith.constant 32 : index
    %23 = vector.load %arg5[%c0_14, %c32] : memref<2x40xf32, #tpu.memory_space<vmem>>, vector<2x8xf32>
    tpu.vector_store %arg5[%c0_14, %c32], %21 {strides = array<i32>} : memref<2x40xf32, #tpu.memory_space<vmem>>, vector<2x8xf32>,
    return
  }
}

</mosaic_0001>

<bundles_post_ra>
// kernel: rnn1_forward.1
= control target key start
LH: loop header
LB: loop body
LE: loop exit
PB: predicated region body
PF: predicated region fallthrough
CT: control target
= control target key end

     0   :  { %10 = vsyncpa [#allocation3], 0  ;;  %s453_s0 = inlined_call_operand.hbm [shape: f32[2,16], index: 0, kind: input, shape index: {}]   ;;  %s454_s1 = inlined_call_operand.hbm [shape: f32[2,32], index: 1, kind: input, shape index: {}]   ;;  %s455_s2 = inlined_call_operand.hbm [shape: f32[16,40], index: 2, kind: input, shape index: {}]   ;;  %s456_s3 = inlined_call_operand.hbm [shape: f32[32,40], index: 3, kind: input, shape index: {}]   ;;  %s457_s4 = inlined_call_operand.vmem [shape: f32[1,40], index: 4, kind: input, shape index: {}]   ;;  %s458_s5 = inlined_call_operand.vmem [shape: f32[2,40], index: 5, kind: output, shape index: {}]  }
   0x1   :  { %11 = vsyncpa [#allocation5], 0 }
   0x2   :  { %12 = vsyncpa [#allocation8], 0  ;;  %s391_s18 = smov [#allocation4]   ;;  %s392_s20 = smov [#allocation2]  }
   0x3   :  { %s29_s19 = sshll.u32 %s391_s18, 4  ;;  %s19_s21 = sshll.u32 %s392_s20, 4  ;;  %s30_s19 = int_to_ptr.vmem [resolvable:$true] %s29_s19  ;;  %s20_s21 = int_to_ptr.vmem [resolvable:$true] %s19_s21 }
   0x4   :  { %s313_s22 = scalar_lea.vmem %s30_s19, 32  ;;  %p318_p1 = scmp.lt.s32.totalorder %s30_s19, %s30_s19 }
   0x5   :  { %p314_p0 = scmp.ne.s32.totalorder %s30_s19, %s313_s22  ;;  %p319_p2 = scmp.lt.s32.totalorder %s313_s22, %s313_s22 }
   0x7   :  { %p320_p3 = por %p319_p2, %p318_p1 }
   0x9   :  { %p321_p4 = pnand %p320_p3, %p314_p0 }
   0xb   :  { %324 = shalt.err (!%p321_p4)
}
   0xc   :  { %32 = dma.hbm_to_vmem [thread:$0]  %s454_s1, 32, %s30_s19, [#allocation5]  }
   0xd   :  { %s333_s25 = scalar_lea.vmem %s20_s21, 32  ;;  %p338_p6 = scmp.lt.s32.totalorder %s20_s21, %s20_s21 }
   0xe   :  { %p334_p5 = scmp.ne.s32.totalorder %s20_s21, %s333_s25  ;;  %p339_p7 = scmp.lt.s32.totalorder %s333_s25, %s333_s25 }
  0x10   :  { %p340_p8 = por %p339_p7, %p338_p6 }
  0x12   :  { %p341_p9 = pnand %p340_p8, %p334_p5 }
  0x14   :  { %344 = shalt.err (!%p341_p9)
}
  0x15   :  { %22 = dma.hbm_to_vmem [thread:$0]  %s453_s0, 32, %s20_s21, [#allocation3]  }
  0x16   :  { %s393_s28 = smov [#allocation6]  }
  0x17   :  { %s38_s29 = sshll.u32 %s393_s28, 4  ;;  %s39_s29 = int_to_ptr.vmem [resolvable:$true] %s38_s29 }
  0x18   :  { %s353_s30 = scalar_lea.vmem %s39_s29, 256  ;;  %p358_p11 = scmp.lt.s32.totalorder %s39_s29, %s39_s29 }
  0x19   :  { %p354_p10 = scmp.ne.s32.totalorder %s39_s29, %s353_s30  ;;  %p359_p12 = scmp.lt.s32.totalorder %s353_s30, %s353_s30 }
  0x1b   :  { %p360_p13 = por %p359_p12, %p358_p11 }
  0x1d   :  { %p361_p0 = pnand %p360_p13, %p354_p10 }
  0x1f   :  { %364 = shalt.err (!%p361_p0)
}
  0x20   :  { %s394_s1 = smov 128   ;;  %s395_s6 = smov 8  }
  0x21   :  { %44 = dma.hbm_to_vmem [thread:$0]  %s455_s2, 256, %s39_s29, [#allocation5], %s394_s1, %s394_s1, %s395_s6  }
  0x22   :  { %s396_s9 = smov [#allocation7]  }
  0x23   :  { %s50_s10 = sshll.u32 %s396_s9, 4  ;;  %s51_s10 = int_to_ptr.vmem [resolvable:$true] %s50_s10 }
  0x24   :  { %s373_s0 = scalar_lea.vmem %s51_s10, 512  ;;  %p378_p2 = scmp.lt.s32.totalorder %s51_s10, %s51_s10 }
  0x25   :  { %p374_p1 = scmp.ne.s32.totalorder %s51_s10, %s373_s0  ;;  %p379_p3 = scmp.lt.s32.totalorder %s373_s0, %s373_s0 }
  0x27   :  { %p380_p4 = por %p379_p3, %p378_p2 }
  0x29   :  { %p381_p5 = pnand %p380_p4, %p374_p1 }
  0x2b   :  { %384 = shalt.err (!%p381_p5)
}
  0x2c   :  { %56 = dma.hbm_to_vmem [thread:$0]  %s456_s3, 512, %s51_s10, [#allocation8], %s394_s1, %s394_s1, %s395_s6  }
  0x2d   :  { %385 = dma.done.wait [#allocation3], 32  }
  0x2e   :  { %386 = vsyncadd [#allocation3], 4294967264 }
  0x2f   :  { %387 = dma.done.wait [#allocation5], 288  }
  0x30   :  { %388 = vsyncadd [#allocation5], 4294967008 }
  0x31   :  { %389 = dma.done.wait [#allocation8], 512  }
  0x32   :  { %390 = vsyncadd [#allocation8], 4294966784  ;;  %v397_v0 = vmov 0.0   ;;  %vm398_vm0 = vmmov 0   ;;  %v78_v1 = vld [vmem:[#allocation7 + $0x18] sm:$0xff]  ;;  %v77_v2 = vld [vmem:[#allocation7 + $0x10] sm:$0xff] }
  0x33   :  { %274 = vmatprep.subr.mxu0 %v397_v0  ;;  %285 = vmatprep.subr.mxu1 %v397_v0  ;;  %v73_v3 = vld [vmem:[#allocation6 + $0x8] sm:$0xff]  ;;  %v72_v4 = vld [vmem:[#allocation6] sm:$0xff]  ;;  %v71_v5 = vld [vmem:[#allocation2] sm:$0x3]  ;;  %vm153_vm1 = vcmask 130048   ;;  %vm79_vm2 = vcmask 261120  }
  0x34   :  { %289 = vmatprep.mubr.msk.f32.mxu1 %vm398_vm0, %v397_v0  ;;  %282 = vmatprep.mubr.msk.f32.mxu0 %vm398_vm0, %v397_v0  ;;  %v76_v6 = vld [vmem:[#allocation7 + $0x8] sm:$0xff]  ;;  %v75_v7 = vld [vmem:[#allocation7] sm:$0xff]  ;;  %vm253_vm3 = vcmask 254976   ;;  %vm235_vm4 = vcmask 320768   ;;  %s399_s15 = smov 96   ;;  %vm246_vm5 = vcmask 58368  }
  0x35   :  { %275 = vmatpush3.msra.mxu0 %v78_v1  ;;  %286 = vmatpush3.msra.mxu1 %v73_v3  ;;  %v74_v8 = vld [vmem:[#allocation4] sm:$0x3]  ;;  %v265_v12 = vld [vmem:[%s457_s4] ss:$0 sm:$0xff] }
  0x36   :  { %276 = vmatprep.subr.mxu0 %v397_v0  ;;  %287 = vmatprep.subr.mxu1 %v397_v0 }
  0x37   :  { %277 = vmatpush3.msra.mxu0 %v77_v2  ;;  %288 = vmatpush3.msra.mxu1 %v72_v4 }
  0x38   :  { %278 = vmatprep.subr.mxu0 %v397_v0  ;;  %290 = vmatmul.mubr.msk.f32.vlgmr.msra.gmra.mxu1 %vm153_vm1, %v71_v5 }
  0x39   :  { %279 = vmatpush3.msra.mxu0 %v76_v6 }
  0x3a   :  { %280 = vmatprep.subr.mxu0 %v397_v0 }
  0x3b   :  { %281 = vmatpush3.msra.mxu0 %v75_v7 }
  0x3c   :  { %283 = vmatmul.mubr.msk.f32.vlgmr.msra.gmra.mxu0 %vm79_vm2, %v74_v8 }
  0xf8   :  { %v223_v9 = vpop.f32.mrf.mxu1 }
  0xfa   :  { %v291_v10 = vpop.f32.mrf.mxu1 }
  0xfc   :  { %v149_v11 = vpop.f32.mrf.mxu0 }
  0xfd   :  { %v224_v13 = vadd.f32 %v223_v9, %v149_v11 }
  0xfe   :  { %v284_v14 = vpop.f32.mrf.mxu0 }
  0xff   :  { %v234_v15 = vadd.f32 %v265_v12, %v224_v13 }
 0x101   :  { %254 = vst.msk [vmem:[%s458_s5] sm:$0x3] %vm253_vm3, %v234_v15  ;;  %v236_v16 = vsel %vm235_vm4, %v234_v15, -inf }
 0x102   :  { %237 = vmax.xlane.f32.xlu0 %v236_v16 }
 0x18b   :  { %v238_v17 = vpop.xlane.xlu0 %237 }
 0x18c   :  { %v239_v18 = vsub.f32 %v234_v15, %v238_v17 }
 0x18e   :  { %v240_v19 = vmul.f32 1.442695, %v239_v18 }
 0x190   :  { %301 = vpow2.f32 %v240_v19 }
 0x19d   :  { %v302_v20 = vpop.eup %301 }
 0x19e   :  { %243 = vrot.lane.b32.xlu0 %v302_v20, %s399_s15 }
 0x210   :  { %v244_v21 = vpop.permute.xlu0 %243 }
 0x211   :  { %v247_v22 = vsel %vm246_vm5, %v244_v21, 0.0 }
 0x212   :  { %248 = vadd.xlane.f32.xlu1 %v247_v22 }
 0x29b   :  { %v249_v23 = vpop.xlane.xlu1 %248 }
 0x29c   :  { %303 = vlog2.f32 %v249_v23 }
 0x2a9   :  { %v304_v24 = vpop.eup %303 }
 0x2aa   :  { %v251_v25 = vmul.f32 0.6931472, %v304_v24 }
 0x2ac   :  { %v252_v26 = vsub.f32 %v239_v18, %v251_v25 }
 0x2ae   :  { %255 = vst.msk [vmem:[%s458_s5] sm:$0x3] %vm235_vm4, %v252_v26 }
 0x2af   :  { %260 = vsyncpa [#allocation3], 1 }
 0x2b0   :  { %261 = vsyncpa [#allocation5], 1 }
 0x2b1   :  { %262 = vsyncpa [#allocation8], 1 }

</bundles_post_ra>
